<compile_context>
chip_gen: v7x
topology: tpu7x:2x2x1
jax: 0.10.0
libtpu: 0.0.40
codegen_flags: <defaults>
</compile_context>

<pallas_src>
import functools

import jax
import jax.numpy as jnp
from jax.experimental import pallas as pl
from jax.experimental.pallas import tpu as pltpu

IGNORE_LABEL = -1

_MAX_TILE_P = 32768            # lanes per grid step cap (multiple of 128)


def _vmem_budget():
    """Generation-aware (input budget, vmem_limit_bytes)."""
    try:
        cap = int(pltpu.get_tpu_info().vmem_capacity_bytes)
    except Exception:
        cap = 128 * 1024 * 1024
    # v7x: 64 MiB/TC -> limit 48 MiB, inputs ~24 MiB.  v5e/v6e: 128 MiB ->
    # limit 96 MiB, inputs ~48 MiB.
    vmem_limit = min(cap * 3 // 4, 96 * 1024 * 1024)
    input_budget = vmem_limit // 2
    return input_budget, vmem_limit


def _choose_tile_p(hw, c, score_itemsize, target_itemsize):
    """Largest 128-multiple pixel tile whose working set fits the VMEM budget."""
    bytes_per_lane = (2 * (c * score_itemsize + target_itemsize)   # double-buffered inputs
                      + 4 * c                                       # class-id iota scratch
                      + 4 * 4)                                      # f32 accumulators (+slack)
    input_budget, _ = _vmem_budget()
    max_by_vmem = input_budget // bytes_per_lane
    hw_rounded = ((hw + 127) // 128) * 128
    tile = min(_MAX_TILE_P, max_by_vmem, hw_rounded)
    tile = max(128, (tile // 128) * 128)
    return int(tile)


def _ce_kernel(score_ref, target_ref, loss_ref, cnt_ref, cls_ref, *, ignore_label):
    """Accumulates per-lane CE loss and valid-pixel flags for one (image, chunk)."""
    t_idx = pl.program_id(2)   # pixel-tile index within the current chunk

    @pl.when(t_idx == 0)
    def _():
        loss_ref[...] = jnp.zeros_like(loss_ref)
        cnt_ref[...] = jnp.zeros_like(cnt_ref)
        # class id per sublane row, built once per chunk (idempotent).
        cls_ref[...] = jax.lax.broadcasted_iota(jnp.int32, cls_ref.shape, 0)

    s = score_ref[...].astype(jnp.float32)    # (C, tile_p), bf16/f32 in HBM
    t = target_ref[...].astype(jnp.int32)     # (1, tile_p), int8/int16/int32 in HBM

    # Padded / out-of-range lanes carry ignore_label in the (padded) target, so
    # any OOB garbage read in the ragged score tail is masked here.
    valid = t != ignore_label                 # (1, tile_p) bool

    # numerically-stable log-sum-exp over the class (sublane) axis
    m = jnp.max(s, axis=0, keepdims=True)                                 # (1, tile_p)
    lse = jnp.log(jnp.sum(jnp.exp(s - m), axis=0, keepdims=True)) + m     # (1, tile_p)

    # gather s[target] via masked select (ignored / padded targets never match)
    picked = jnp.sum(jnp.where(cls_ref[...] == t, s, 0.0), axis=0, keepdims=True)

    # lane-parallel elementwise accumulation (no cross-lane reduce per step)
    loss_ref[...] += jnp.where(valid, lse - picked, 0.0)
    cnt_ref[...] += valid.astype(jnp.float32)


def cross_entropy_loss(score, target, ignore_label=IGNORE_LABEL, tile_p=None,
                       upsample_dtype=jnp.bfloat16):
    """score: (N, C, Hs, Ws) float; target: (N, H, W) int. Returns scalar mean loss."""
    n, c, ph, pw = score.shape
    _, h, w = target.shape

    if ph != h or pw != w:
        # F.upsample(mode='bilinear') default == align_corners=False half-pixel
        # sampling, which jax.image.resize 'bilinear' matches (upsampling path).
        # Emit the full-res intermediate in bf16 to halve the HBM round-trip.
        # TODO(synk): fuse the bilinear upsample into the kernel (DMA the two
        # contributing low-res rows per tile) to avoid materializing (N,C,H,W).
        score = jax.image.resize(score, (n, c, h, w), method="bilinear")
        if upsample_dtype is not None:
            score = score.astype(upsample_dtype)

    hw = h * w
    score_flat = score.reshape(n, c, hw)                 # free reshape of NCHW

    if tile_p is None:
        tile_p = _choose_tile_p(hw, c,
                                jnp.dtype(score_flat.dtype).itemsize,
                                1 if c <= 127 else (2 if c <= 32767 else 4))
    assert tile_p % 128 == 0

    total_tiles = pl.cdiv(hw, tile_p)
    # Give v7x's second TensorCore pixel-chunk work when the batch is tiny
    # (each TC has its own HBM path); no effect on single-TC v5e/v6e.
    n_chunks = 1 if n >= 2 else min(2, total_tiles)
    tiles_per_chunk = pl.cdiv(total_tiles, n_chunks)
    hw_padded = n_chunks * tiles_per_chunk * tile_p
    last_blk = total_tiles - 1

    # Narrow target dtype to cut its HBM traffic; pad the pixel axis with
    # ignore_label so ragged / chunk-padding tiles need no in-kernel mask.
    if c <= 127 and -128 <= ignore_label <= 127:
        tgt_dtype = jnp.int8
    elif c <= 32767 and -32768 <= ignore_label <= 32767:
        tgt_dtype = jnp.int16
    else:
        tgt_dtype = jnp.int32
    target_flat = target.reshape(n, 1, hw).astype(jnp.int32)
    target_flat = jnp.pad(target_flat, ((0, 0), (0, 0), (0, hw_padded - hw)),
                          constant_values=ignore_label).astype(tgt_dtype)

    _, vmem_limit = _vmem_budget()
    kernel = functools.partial(_ce_kernel, ignore_label=ignore_label)

    loss_acc, cnt_acc = pl.pallas_call(
        kernel,
        out_shape=(jax.ShapeDtypeStruct((n, n_chunks, 1, tile_p), jnp.float32),
                   jax.ShapeDtypeStruct((n, n_chunks, 1, tile_p), jnp.float32)),
        grid_spec=pltpu.PrefetchScalarGridSpec(
            num_scalar_prefetch=0,
            grid=(n, n_chunks, tiles_per_chunk),
            in_specs=[
                # Score stays unpadded; fully-out-of-range chunk-padding tiles
                # are clamped to the last real block (their lanes are masked by
                # the ignore_label-padded target anyway).
                pl.BlockSpec(
                    (None, c, tile_p),
                    lambda b, ch, t: (b, 0,
                                      jnp.minimum(ch * tiles_per_chunk + t, last_blk))),
                pl.BlockSpec(
                    (None, 1, tile_p),
                    lambda b, ch, t: (b, 0, ch * tiles_per_chunk + t)),
            ],
            out_specs=[
                pl.BlockSpec((None, None, 1, tile_p), lambda b, ch, t: (b, ch, 0, 0)),
                pl.BlockSpec((None, None, 1, tile_p), lambda b, ch, t: (b, ch, 0, 0)),
            ],
            scratch_shapes=[pltpu.VMEM((c, tile_p), jnp.int32)],   # class-id iota
        ),
        compiler_params=pltpu.CompilerParams(
            # batch & pixel-chunk axes "parallel" -> v7x megacore sharding;
            # tile axis "arbitrary" because outputs accumulate across it.
            dimension_semantics=("parallel", "parallel", "arbitrary"),
            vmem_limit_bytes=vmem_limit),
    )(score_flat, target_flat)

    # mean over non-ignored pixels (CrossEntropyLoss default reduction='mean').
    # NOTE: an all-ignored batch gives 0/0 = NaN, matching PyTorch.
    total = jnp.sum(loss_acc)
    count = jnp.sum(cnt_acc)
    return (total / count).astype(jnp.float32)
    # TODO(synk): per-class weights (weight != None) are not implemented.


def _reference_loss(score, target, ignore_label=IGNORE_LABEL,
                    upsample_dtype=jnp.bfloat16):
    """Pure-JAX reference (same upsample path as the kernel wrapper)."""
    n, c, ph, pw = score.shape
    _, h, w = target.shape
    if ph != h or pw != w:
        score = jax.image.resize(score, (n, c, h, w), method="bilinear")
        if upsample_dtype is not None:
            score = score.astype(upsample_dtype)
    logits = jnp.transpose(score, (0, 2, 3, 1)).reshape(-1, c).astype(jnp.float32)
    tgt = target.reshape(-1)
    logp = jax.nn.log_softmax(logits, axis=-1)
    valid = tgt != ignore_label
    safe_t = jnp.where(valid, tgt, 0)
    nll = -jnp.take_along_axis(logp, safe_t[:, None], axis=-1)[:, 0]
    nll = jnp.where(valid, nll, 0.0)
    return jnp.sum(nll) / jnp.sum(valid.astype(jnp.float32))


if __name__ == "__main__":
    # Case 1: same-resolution f32 logits, pixel count an exact multiple of 128.
    k1, k2, k3 = jax.random.split(jax.random.PRNGKey(0), 3)
    N, C, H, W = 2, 4, 16, 16
    score = jax.random.normal(k1, (N, C, H, W), dtype=jnp.float32)
    target = jax.random.randint(k2, (N, H, W), 0, C, dtype=jnp.int32)
    ignore_mask = jax.random.uniform(k3, (N, H, W)) < 0.1
    target = jnp.where(ignore_mask, IGNORE_LABEL, target)

    loss = jax.block_until_ready(cross_entropy_loss(score, target))
    ref = jax.block_until_ready(_reference_loss(score, target))
    assert jnp.allclose(loss, ref, atol=1e-5, rtol=1e-5), (loss, ref)

    # Case 2: N=1 (exercises the megacore pixel-chunk split), low-res logits
    # (bilinear upsample -> bf16 path), and a ragged final tile
    # (H*W = 200 with tile_p = 128 -> chunks of 1 tile each, tail masked via
    # the ignore_label-padded target).
    k4, k5, k6 = jax.random.split(jax.random.PRNGKey(1), 3)
    N2, C2, H2, W2 = 1, 5, 20, 10
    score2 = jax.random.normal(k4, (N2, C2, H2 // 2, W2 // 2), dtype=jnp.float32)
    target2 = jax.random.randint(k5, (N2, H2, W2), 0, C2, dtype=jnp.int32)
    ignore_mask2 = jax.random.uniform(k6, (N2, H2, W2)) < 0.2
    target2 = jnp.where(ignore_mask2, IGNORE_LABEL, target2)

    loss2 = jax.block_until_ready(cross_entropy_loss(score2, target2, tile_p=128))
    ref2 = jax.block_until_ready(_reference_loss(score2, target2))
    assert jnp.allclose(loss2, ref2, atol=1e-5, rtol=1e-5), (loss2, ref2)

    print("KERNEL_OK")
</pallas_src>

<mosaic_0001>
module attributes {stable_mosaic.version = 11 : i64} {
  func.func @_ce_kernel(%arg0: i32, %arg1: i32, %arg2: i32, %arg3: memref<1x4x256xf32, #tpu.memory_space<vmem>>, %arg4: memref<1x1x256xi8, #tpu.memory_space<vmem>>, %arg5: memref<1x1x1x256xf32, #tpu.memory_space<vmem>>, %arg6: memref<1x1x1x256xf32, #tpu.memory_space<vmem>>, %arg7: memref<4x256xi32, #tpu.memory_space<vmem>>) attributes {dimension_semantics = [#tpu.dimension_semantics<parallel>, #tpu.dimension_semantics<parallel>, #tpu.dimension_semantics<arbitrary>], iteration_bounds = array<i64: 2, 1, 1>, scalar_prefetch = 0 : i64, scratch_operands = 1 : i64, tpu.core_type = #tpu.core_type<tc>, window_params = [{transform_indices = @transform_0, window_bounds = array<i64: 1, 4, 256>}, {transform_indices = @transform_1, window_bounds = array<i64: 1, 1, 256>}, {transform_indices = @transform_2, window_bounds = array<i64: 1, 1, 1, 256>}, {transform_indices = @transform_3, window_bounds = array<i64: 1, 1, 1, 256>}]} {
    %c0_i32 = arith.constant 0 : i32
    %0 = arith.cmpi eq, %arg2, %c0_i32 : i32
    %1 = arith.extui %0 : i1 to i32
    %c0_i32_0 = arith.constant 0 : i32
    %2 = arith.cmpi ne, %1, %c0_i32_0 : i32
    scf.if %2 {
      %cst_28 = arith.constant 0.000000e+00 : f32
      %43 = vector.broadcast %cst_28 : f32 to vector<1x256xf32>
      %c0_29 = arith.constant 0 : index
      %c0_30 = arith.constant 0 : index
      %c0_31 = arith.constant 0 : index
      %c0_32 = arith.constant 0 : index
      %44 = vector.load %arg5[%c0_29, %c0_30, %c0_31, %c0_32] : memref<1x1x1x256xf32, #tpu.memory_space<vmem>>, vector<1x1x1x256xf32>
      %45 = vector.shape_cast %44 : vector<1x1x1x256xf32> to vector<1x256xf32>
      %46 = vector.shape_cast %43 : vector<1x256xf32> to vector<1x1x1x256xf32>
      tpu.vector_store %arg5[%c0_29, %c0_30, %c0_31, %c0_32], %46 {strides = array<i32>} : memref<1x1x1x256xf32, #tpu.memory_space<vmem>>, vector<1x1x1x256xf32>,
      %cst_33 = arith.constant 0.000000e+00 : f32
      %47 = vector.broadcast %cst_33 : f32 to vector<1x256xf32>
      %c0_34 = arith.constant 0 : index
      %c0_35 = arith.constant 0 : index
      %c0_36 = arith.constant 0 : index
      %c0_37 = arith.constant 0 : index
      %48 = vector.load %arg6[%c0_34, %c0_35, %c0_36, %c0_37] : memref<1x1x1x256xf32, #tpu.memory_space<vmem>>, vector<1x1x1x256xf32>
      %49 = vector.shape_cast %48 : vector<1x1x1x256xf32> to vector<1x256xf32>
      %50 = vector.shape_cast %47 : vector<1x256xf32> to vector<1x1x1x256xf32>
      tpu.vector_store %arg6[%c0_34, %c0_35, %c0_36, %c0_37], %50 {strides = array<i32>} : memref<1x1x1x256xf32, #tpu.memory_space<vmem>>, vector<1x1x1x256xf32>,
      %51 = tpu.iota {dimensions = array<i32: 0>} : vector<4x256xi32>
      %c0_38 = arith.constant 0 : index
      %c0_39 = arith.constant 0 : index
      %52 = vector.load %arg7[%c0_38, %c0_39] : memref<4x256xi32, #tpu.memory_space<vmem>>, vector<4x256xi32>
      tpu.vector_store %arg7[%c0_38, %c0_39], %51 {strides = array<i32>} : memref<4x256xi32, #tpu.memory_space<vmem>>, vector<4x256xi32>,
    } else {
    }
    %c0 = arith.constant 0 : index
    %c0_1 = arith.constant 0 : index
    %c0_2 = arith.constant 0 : index
    %3 = vector.load %arg3[%c0, %c0_1, %c0_2] : memref<1x4x256xf32, #tpu.memory_space<vmem>>, vector<1x4x256xf32>
    %4 = vector.shape_cast %3 : vector<1x4x256xf32> to vector<4x256xf32>
    %c0_3 = arith.constant 0 : index
    %c0_4 = arith.constant 0 : index
    %c0_5 = arith.constant 0 : index
    %5 = vector.load %arg4[%c0_3, %c0_4, %c0_5] : memref<1x1x256xi8, #tpu.memory_space<vmem>>, vector<1x1x256xi8>
    %6 = vector.shape_cast %5 : vector<1x1x256xi8> to vector<1x256xi8>
    %7 = arith.extsi %6 : vector<1x256xi8> to vector<1x256xi32>
    %c-1_i32 = arith.constant -1 : i32
    %8 = vector.broadcast %c-1_i32 : i32 to vector<1x256xi32>
    %9 = arith.cmpi ne, %7, %8 : vector<1x256xi32>
    %cst = arith.constant dense<0xFF800000> : vector<256xf32>
    %10 = vector.multi_reduction <maximumf>, %4, %cst [0] : vector<4x256xf32> to vector<256xf32>
    %11 = vector.shape_cast %10 : vector<256xf32> to vector<1x256xf32>
    %12 = vector.broadcast %11 : vector<1x256xf32> to vector<4x256xf32>
    %13 = arith.subf %4, %12 : vector<4x256xf32>
    %14 = math.exp %13 : vector<4x256xf32>
    %cst_6 = arith.constant dense<0.000000e+00> : vector<256xf32>
    %15 = vector.multi_reduction <add>, %14, %cst_6 [0] : vector<4x256xf32> to vector<256xf32>
    %16 = vector.shape_cast %15 : vector<256xf32> to vector<1x256xf32>
    %17 = math.log %16 : vector<1x256xf32>
    %18 = arith.addf %17, %11 : vector<1x256xf32>
    %c0_7 = arith.constant 0 : index
    %c0_8 = arith.constant 0 : index
    %19 = vector.load %arg7[%c0_7, %c0_8] : memref<4x256xi32, #tpu.memory_space<vmem>>, vector<4x256xi32>
    %20 = vector.broadcast %7 : vector<1x256xi32> to vector<4x256xi32>
    %21 = arith.cmpi eq, %19, %20 : vector<4x256xi32>
    %cst_9 = arith.constant 0.000000e+00 : f32
    %22 = vector.broadcast %cst_9 : f32 to vector<4x256xf32>
    %23 = arith.select %21, %4, %22 : vector<4x256xi1>, vector<4x256xf32>
    %cst_10 = arith.constant dense<0.000000e+00> : vector<256xf32>
    %24 = vector.multi_reduction <add>, %23, %cst_10 [0] : vector<4x256xf32> to vector<256xf32>
    %25 = vector.shape_cast %24 : vector<256xf32> to vector<1x256xf32>
    %c0_11 = arith.constant 0 : index
    %c0_12 = arith.constant 0 : index
    %c0_13 = arith.constant 0 : index
    %c0_14 = arith.constant 0 : index
    %26 = vector.load %arg5[%c0_11, %c0_12, %c0_13, %c0_14] : memref<1x1x1x256xf32, #tpu.memory_space<vmem>>, vector<1x1x1x256xf32>
    %27 = vector.shape_cast %26 : vector<1x1x1x256xf32> to vector<1x256xf32>
    %28 = arith.subf %18, %25 : vector<1x256xf32>
    %cst_15 = arith.constant 0.000000e+00 : f32
    %29 = vector.broadcast %cst_15 : f32 to vector<1x256xf32>
    %30 = arith.select %9, %28, %29 : vector<1x256xi1>, vector<1x256xf32>
    %31 = arith.addf %27, %30 : vector<1x256xf32>
    %c0_16 = arith.constant 0 : index
    %c0_17 = arith.constant 0 : index
    %c0_18 = arith.constant 0 : index
    %c0_19 = arith.constant 0 : index
    %32 = vector.load %arg5[%c0_16, %c0_17, %c0_18, %c0_19] : memref<1x1x1x256xf32, #tpu.memory_space<vmem>>, vector<1x1x1x256xf32>
    %33 = vector.shape_cast %32 : vector<1x1x1x256xf32> to vector<1x256xf32>
    %34 = vector.shape_cast %31 : vector<1x256xf32> to vector<1x1x1x256xf32>
    tpu.vector_store %arg5[%c0_16, %c0_17, %c0_18, %c0_19], %34 {strides = array<i32>} : memref<1x1x1x256xf32, #tpu.memory_space<vmem>>, vector<1x1x1x256xf32>,
    %c0_20 = arith.constant 0 : index
    %c0_21 = arith.constant 0 : index
    %c0_22 = arith.constant 0 : index
    %c0_23 = arith.constant 0 : index
    %35 = vector.load %arg6[%c0_20, %c0_21, %c0_22, %c0_23] : memref<1x1x1x256xf32, #tpu.memory_space<vmem>>, vector<1x1x1x256xf32>
    %36 = vector.shape_cast %35 : vector<1x1x1x256xf32> to vector<1x256xf32>
    %37 = arith.extui %9 : vector<1x256xi1> to vector<1x256xi32>
    %38 = arith.sitofp %37 : vector<1x256xi32> to vector<1x256xf32>
    %39 = arith.addf %36, %38 : vector<1x256xf32>
    %c0_24 = arith.constant 0 : index
    %c0_25 = arith.constant 0 : index
    %c0_26 = arith.constant 0 : index
    %c0_27 = arith.constant 0 : index
    %40 = vector.load %arg6[%c0_24, %c0_25, %c0_26, %c0_27] : memref<1x1x1x256xf32, #tpu.memory_space<vmem>>, vector<1x1x1x256xf32>
    %41 = vector.shape_cast %40 : vector<1x1x1x256xf32> to vector<1x256xf32>
    %42 = vector.shape_cast %39 : vector<1x256xf32> to vector<1x1x1x256xf32>
    tpu.vector_store %arg6[%c0_24, %c0_25, %c0_26, %c0_27], %42 {strides = array<i32>} : memref<1x1x1x256xf32, #tpu.memory_space<vmem>>, vector<1x1x1x256xf32>,
    return
  }
  func.func @transform_0(%arg0: i32, %arg1: i32, %arg2: i32) -> (i32, i32, i32) {
    %c1_i32 = arith.constant 1 : i32
    %0 = arith.muli %arg1, %c1_i32 : i32
    %1 = arith.addi %0, %arg2 : i32
    %c0_i32 = arith.constant 0 : i32
    %2 = arith.minsi %1, %c0_i32 : i32
    %c0_i32_0 = arith.constant 0 : i32
    %c0_i32_1 = arith.constant 0 : i32
    return %arg0, %c0_i32_0, %2 : i32, i32, i32
  }
  func.func @transform_1(%arg0: i32, %arg1: i32, %arg2: i32) -> (i32, i32, i32) {
    %c1_i32 = arith.constant 1 : i32
    %0 = arith.muli %arg1, %c1_i32 : i32
    %1 = arith.addi %0, %arg2 : i32
    %c0_i32 = arith.constant 0 : i32
    %c0_i32_0 = arith.constant 0 : i32
    return %arg0, %c0_i32, %1 : i32, i32, i32
  }
  func.func @transform_2(%arg0: i32, %arg1: i32, %arg2: i32) -> (i32, i32, i32, i32) {
    %c0_i32 = arith.constant 0 : i32
    %c0_i32_0 = arith.constant 0 : i32
    %c0_i32_1 = arith.constant 0 : i32
    return %arg0, %arg1, %c0_i32, %c0_i32_0 : i32, i32, i32, i32
  }
  func.func @transform_3(%arg0: i32, %arg1: i32, %arg2: i32) -> (i32, i32, i32, i32) {
    %c0_i32 = arith.constant 0 : i32
    %c0_i32_0 = arith.constant 0 : i32
    %c0_i32_1 = arith.constant 0 : i32
    return %arg0, %arg1, %c0_i32, %c0_i32_0 : i32, i32, i32, i32
  }
}

</mosaic_0001>

<bundles_post_ra>
// kernel: tpu_custom_call.1
= control target key start
LH: loop header
LB: loop body
LE: loop exit
PB: predicated region body
PF: predicated region fallthrough
CT: control target
= control target key end

     0   :  { %9 = vsyncpa [#allocation4], 0  ;;  %s1260_s0 = inlined_call_operand.hbm [shape: f32[2,4,256], index: 0, kind: input, shape index: {}]   ;;  %s1261_s1 = inlined_call_operand.hbm [shape: s8[2,1,256], index: 1, kind: input, shape index: {}]   ;;  %s1262_s2 = inlined_call_operand.hbm [shape: f32[2,1,1,256], index: 2, kind: output, shape index: {0}]   ;;  %s1263_s3 = inlined_call_operand.hbm [shape: f32[2,1,1,256], index: 3, kind: output, shape index: {1}]  }
   0x1   :  { %11 = vsyncpa [#allocation4 + $0x1], 0 }
   0x2   :  { %12 = vsyncpa [#allocation7], 0 }
   0x3   :  { %14 = vsyncpa [#allocation7 + $0x1], 0 }
   0x4   :  { %15 = vsyncpa [#allocation5], 0 }
   0x5   :  { %17 = vsyncpa [#allocation5 + $0x1], 0 }
   0x6   :  { %18 = vsyncpa [#allocation10], 0 }
   0x7   :  { %20 = vsyncpa [#allocation10 + $0x1], 0  ;;  %s949_s12 = smov 0   ;;  %s951_s13 = smov 0  }
   0x8   :  { %s953_s14 = smov 0   ;;  %s955_s15 = smov 0  }
   0x9   :  { %s957_s16 = smov 0   ;;  %s959_s17 = smov 0  }
   0xa LB: > { %s632_s18 = sadd.s32 4294967295, %s920_s17   ;;  %s633_s19 = sadd.s32 4294967294, %s920_s17   ;;  %s920_s17 = sphi %s959_s17, %s26_s17   ;;  %s916_s16 = sphi %s957_s16, %s1285_s16   ;;  %s912_s15 = sphi %s955_s15, %s1284_s15   ;;  %s908_s14 = sphi %s953_s14, %s1283_s14   ;;  %s904_s13 = sphi %s951_s13, %s1282_s13   ;;  %s900_s12 = sphi %s949_s12, %s1281_s12  }
   0xb   : > { %s45_s20 = sadd.s32 1, %s916_s16  ;;  %s60_s21 = sadd.s32 1, %s908_s14 }
   0xc   : > { %p47_p0 = scmp.ge.s32.totalorder %s45_s20, 2  ;;  %p67_p1 = scmp.ne.s32.totalorder %s908_s14, %s904_s13 }
   0xd   : > { %p68_p2 = scmp.eq.s32.totalorder %s920_s17, 0  ;;  %p73_p3 = scmp.ne.s32.totalorder %s904_s13, %s900_s12 }
   0xe   : > { %s1287_s20 = smov (%p47_p0, %s45_s20), 0  ;;  %p74_p5 = scmp.eq.s32.totalorder %s632_s18, 0 }
   0xf   : > { %p990_p4 = por %p68_p2, %p67_p1  ;;  %s55_s23 = ssub.s32 %s916_s16, %s1287_s20 }
  0x10   : > { %p129_p6 = scmp.eq.s32.totalorder %s632_s18, 1  ;;  %p58_p7 = scmp.eq.s32.totalorder %s55_s23, 0 }
  0x11   : > { %p996_p8 = por %p74_p5, %p73_p3  ;;  %p135_p10 = scmp.eq.s32.totalorder %s633_s19, 1 }
  0x12   : > { %p1000_p9 = por %p129_p6, %p67_p1  ;;  %p682_p13 = scmp.lt.s32.totalorder %s920_s17, 2 }
  0x13   : > { %s1267_s24 = scalar_select %p996_p8, 1, 0 }
  0x14   : > { %s1268_s25 = scalar_select %p1000_p9, 1, 0 }
  0x15   : > { %s1005_s26 = scalar_select %p58_p7, %s908_s14, %s60_s21  }
  0x16   : > { %p1007_p11 = por %p135_p10, %p73_p3  ;;  %s1014_s28 = sand.u32 1, %s908_s14  }
  0x17   : > { %s636_s29 = sshll.u32 %s1014_s28, 3  ;;  %s656_s30 = sshll.u32 %s916_s16, 7 }
  0x18   : > { %s1269_s27 = scalar_select %p1007_p11, 1, 0 }
  0x19   : > { %s1021_s6 = scalar_lea.hbm %s1260_s0, %s656_s30  ;;  %s187_s7 = scalar_lea.vmem [#allocation3], %s636_s29 }
  0x1a   : > { %s200_s8 = sshll.u32 %s187_s7, 4  ;;  %p1027_p0 = pnand %p682_p13, %p990_p4  ;;  %s1023_s8 = int_to_ptr.vmem [resolvable:$true] %s200_s8 }
  0x1b   : > { %s184_s10 = scalar_lea.sflag [#allocation4], %s1014_s28  ;;  %s742_s11 = scalar_lea.hbm %s1021_s6, 128 }
  0x1c   : > { %p743_p3 = scmp.ne.s32.totalorder %s1021_s6, %s742_s11  ;;  %p744_p5 = pneg %p1027_p0 }
  0x1d   : > { %s747_s21 = scalar_lea.hbm %s1260_s0, 256  ;;  %p748_p4 = scmp.lt.u32.totalorder %s1021_s6, %s1260_s0 }
  0x1e   : > { %p745_p6 = pnand %p744_p5, %p743_p3  ;;  %p749_p10 = scmp.lt.u32.totalorder %s747_s21, %s742_s11 }
  0x1f   : > { %p751_p12 = scmp.lt.u32.totalorder %s742_s11, %s1021_s6 }
  0x20   : > { %p746_p7 = pneg %p745_p6  ;;  %p750_p13 = por %p749_p10, %p748_p4 }
  0x22   : > { %p752_p1 = por %p751_p12, %p750_p13 }
  0x24   : > { %p753_p2 = pnand %p752_p1, %p746_p7 }
  0x26   : > { %756 = shalt.err (!%p753_p2)
}
  0x27   : > { %s757_s29 = scalar_lea.vmem %s1023_s8, 128  ;;  %s922_s30 = smov [#allocation3]  }
  0x28   : > { %p758_p3 = scmp.ne.s32.totalorder %s1023_s8, %s757_s29  ;;  %s762_s4 = sshll.u32 %s922_s30, 4  ;;  %s763_s4 = int_to_ptr.vmem [resolvable:$false] %s762_s4 }
  0x29   : > { %s764_s5 = scalar_lea.vmem %s763_s4, 256  ;;  %p765_p9 = scmp.lt.s32.totalorder %s1023_s8, %s763_s4 }
  0x2a   : > { %p760_p6 = pnand %p758_p3, %p744_p5  ;;  %p766_p4 = scmp.lt.s32.totalorder %s764_s5, %s757_s29 }
  0x2c   : > { %p761_p11 = pneg %p760_p6  ;;  %p767_p10 = por %p766_p4, %p765_p9 }
  0x2e   : > { %p768_p12 = pnand %p767_p10, %p761_p11 }
  0x30   : > { %771 = shalt.err (!%p768_p12)
}
  0x31   : > { %671 = dma.hbm_to_vmem [thread:$0]  (!%p1027_p0), %s1021_s6, 128, %s1023_s8, %s184_s10  }
  0x32   : > { %p1271_p1 = scmp.lt.s32.totalorder %s920_s17, 3  ;;  %p1272_p2 = scmp.ge.s32.totalorder %s920_s17, 1 }
  0x33   : > { %s639_s11 = sshll.u32 %s1014_s28, 1  ;;  %s657_s18 = sshll.u32 %s916_s16, 5 }
  0x34   : > { %p1063_p7 = pnand %p1272_p2, %p1271_p1  ;;  %s1072_s22 = scalar_lea.hbm %s1261_s1, %s657_s18 }
  0x35   : > { %s211_s23 = scalar_lea.vmem [#allocation6], %s639_s11  ;;  %s208_s6 = scalar_lea.sflag [#allocation7], %s1014_s28 }
  0x36   : > { %s1273_s7 = scalar_select %p1063_p7, 1, 0 }
  0x37   : > { %s222_s29 = sshll.u32 %s211_s23, 4  ;;  %s772_s8 = scalar_lea.hbm %s1072_s22, 32  ;;  %s223_s29 = int_to_ptr.vmem [resolvable:$true] %s222_s29 }
  0x38   : > { %p773_p9 = scmp.ne.s32.totalorder %s1072_s22, %s772_s8  ;;  %s777_s4 = scalar_lea.hbm %s1261_s1, 64 }
  0x39   : > { %p778_p3 = scmp.lt.u32.totalorder %s1072_s22, %s1261_s1  ;;  %p779_p6 = scmp.lt.u32.totalorder %s777_s4, %s772_s8 }
  0x3a   : > { %p775_p11 = pnand %p773_p9, %p744_p5  ;;  %p781_p10 = scmp.lt.u32.totalorder %s772_s8, %s1072_s22 }
  0x3b   : > { %p780_p4 = por %p779_p6, %p778_p3 }
  0x3c   : > { %p776_p13 = pneg %p775_p11 }
  0x3d   : > { %p782_p12 = por %p781_p10, %p780_p4 }
  0x3f   : > { %p783_p1 = pnand %p782_p12, %p776_p13 }
  0x41   : > { %786 = shalt.err (!%p783_p1)
}
  0x42   : > { %s787_s28 = scalar_lea.vmem %s223_s29, 32  ;;  %s923_s11 = smov [#allocation6]  }
  0x43   : > { %p788_p2 = scmp.ne.s32.totalorder %s223_s29, %s787_s28  ;;  %s792_s19 = sshll.u32 %s923_s11, 4  ;;  %s793_s19 = int_to_ptr.vmem [resolvable:$false] %s792_s19 }
  0x44   : > { %s794_s21 = scalar_lea.vmem %s793_s19, 64  ;;  %p795_p8 = scmp.lt.s32.totalorder %s223_s29, %s793_s19 }
  0x45   : > { %p790_p9 = pnand %p788_p2, %p744_p5  ;;  %p796_p7 = scmp.lt.s32.totalorder %s794_s21, %s787_s28 }
  0x47   : > { %p791_p11 = pneg %p790_p9  ;;  %p797_p3 = por %p796_p7, %p795_p8 }
  0x49   : > { %p798_p6 = pnand %p797_p3, %p791_p11 }
  0x4b   : > { %801 = shalt.err (!%p798_p6)
}
  0x4c   : > { %674 = dma.hbm_to_vmem [thread:$0]  (!%p1027_p0), %s1072_s22, 32, %s223_s29, %s208_s6  }
  0x4d   : > { %p1274_p13 = scmp.ne.s32.totalorder %s1273_s7, 0 }
  0x4e   : > { %s1097_s23 = sand.u32 (!%p1274_p13), 1, %s904_s13   ;;  %p1275_p5 = scmp.ne.s32.totalorder (!%p1274_p13), %s1267_s24, 0 }
  0x4f   : > { %231 = sbr.rel (%p1274_p13) target bundleno = 191 (0xbf), region = 28  ;;  %s643_s8 = sshll.u32 (!%p1274_p13), %s1097_s23, 3 }
  0x50   : > { %s234_s10 = scalar_lea.sflag (!%p1274_p13), [#allocation4], %s1097_s23  ;;  %s237_s30 = scalar_lea.vmem (!%p1274_p13), [#allocation3], %s643_s8 }
  0x56   : > { %883 = dma.done.wait (%p1275_p5), %s234_s10, 128  }
  0x57   : > { %885 = vsyncadd (%p1275_p5), %s234_s10, 4294967168  ;;  %s644_s9 = sshll.u32 %s1097_s23, 1  ;;  %s243_s7 = scalar_lea.sflag [#allocation7], %s1097_s23 }
  0x58   : > { %s246_s22 = scalar_lea.vmem [#allocation6], %s644_s9 }
  0x59   : > { %887 = dma.done.wait (%p1275_p5), %s243_s7, 32  }
  0x5a   : > { %889 = vsyncadd (%p1275_p5), %s243_s7, 4294967264  ;;  %v289_v0 = vlaneseq  ;;  %v924_v2 = vmov 1966171168   ;;  %s1115_s29 = scalar_lea.vmem [#allocation8], %s644_s9  ;;  %v925_v4 = vmov 0.0   ;;  %s1120_s6 = scalar_lea.vmem [#allocation9], %s644_s9 }
  0x5b   : > { %v404_v3 = vunpack.c.l.s4 %v924_v2  ;;  %vm312_vm1 = vcmask 1043456   ;;  %v1127_v7 = vld [vmem:[%s237_s30] sm:$0xff]  ;;  %v306_v8 = vld [vmem:[%s246_s22] sm:$0x3]  ;;  %s658_s24 = sshll.u32 %s912_s15, 5  ;;  %s483_s4 = sshll.u32 %s1120_s6, 4  ;;  %s1154_s4 = int_to_ptr.vmem [resolvable:$true] %s483_s4 }
  0x5c   : > { %vm1111_vm0 = vcmp.lt.s32.totalorder %v289_v0, 256  ;;  %v1125_v6 = vshrl.u32 %v289_v0, 7  ;;  %v1129_v9 = vunpack.c.0.s8 %v306_v8  ;;  %v310_v10 = vcombine.high %v1127_v7, %v1127_v7  ;;  %s1152_s28 = scalar_lea.hbm %s1263_s3, %s658_s24  ;;  %s451_s11 = scalar_lea.sflag [#allocation10], %s1097_s23 }
  0x5d   : > { %293 = vst.msk [vmem:[%s1115_s29] sm:$0x3] %vm1111_vm0, %v925_v4  ;;  %294 = vst.msk [vmem:[%s1120_s6] sm:$0x3] %vm1111_vm0, %v925_v4  ;;  %v405_v5 = vunpack.c.0.s8 %v404_v3  ;;  %v313_v11 = vsel %vm312_vm1, %v1127_v7, -inf  ;;  %s802_s19 = scalar_lea.vmem %s1154_s4, 32 }
  0x5e   : > { %v314_v13 = vrot.slane %v313_v11, 4  ;;  %vm308_vm2 = vcmp.ne.s32.totalorder %v1129_v9, 4294967295  ;;  %v320_v14 = vsel %vm312_vm1, %v310_v10, -inf  ;;  %v926_v25 = vmov 839922192   ;;  %p803_p8 = scmp.ne.s32.totalorder %s1154_s4, %s802_s19  ;;  %p1278_p0 = scmp.ne.s32.totalorder %s1268_s25, 0 }
  0x5f   : > { %v1136_v12 = vsub.s32 %v405_v5, %v1125_v6  ;;  %v321_v16 = vrot.slane %v320_v14, 4  ;;  %v647_v17 = vsel %vm308_vm2, 1.0, %v925_v4  ;;  %v298_v26 = vunpack.c.l.s4 %v926_v25  ;;  %s927_s21 = smov [#allocation9]  }
  0x60   : > { %v315_v15 = vmax.f32 %v313_v11, %v314_v13  ;;  %v360_v30 = vsub.s32 0, %v1125_v6  ;;  %v364_v31 = vsub.s32 4, %v1125_v6  ;;  %p804_p7 = pnand %p803_p8, %p1278_p0  ;;  %s806_s8 = sshll.u32 %s927_s21, 4  ;;  %s807_s8 = int_to_ptr.vmem [resolvable:$false] %s806_s8 }
  0x61   : > { %v434_v18 = vrot.slane %v647_v17, %v1136_v12  ;;  %v322_v20 = vmax.f32 %v320_v14, %v321_v16  ;;  %s808_s10 = scalar_lea.vmem %s807_s8, 64  ;;  %p809_p10 = scmp.lt.s32.totalorder %s1154_s4, %s807_s8 }
  0x62   : > { %v316_v19 = vrot.slane %v315_v15, 2  ;;  %p805_p4 = pneg %p804_p7  ;;  %p810_p12 = scmp.lt.s32.totalorder %s808_s10, %s802_s19 }
  0x63   : > { %v441_v22 = vrot.slane %v434_v18, %v1136_v12  ;;  %v323_v24 = vrot.slane %v322_v20, 2 }
  0x64   : > { %v424_v21 = vld [vmem:[%s1120_s6] sm:$0x3]  ;;  %v317_v23 = vmax.f32 %v315_v15, %v316_v19  ;;  %p811_p1 = por %p810_p12, %p809_p10 }
  0x65   : > { %v443_v27 = vadd.f32 %v441_v22, %v424_v21  ;;  %v324_v29 = vmax.f32 %v322_v20, %v323_v24 }
  0x66   : > { %v318_v28 = vrot.slane %v317_v23, 1  ;;  %p812_p2 = pnand %p811_p1, %p805_p4 }
  0x67   : > { %444 = vst.msk [vmem:[%s1120_s6] sm:$0x3] %vm1111_vm0, %v443_v27  ;;  %v325_v33 = vrot.slane %v324_v29, 1 }
  0x68   : > { %v1161_v32 = vmax.f32 %v317_v23, %v318_v28 }
  0x69   : > { %815 = shalt.err (!%p812_p2)
}
  0x6a   : > { %s816_s30 = scalar_lea.hbm %s1152_s28, 32  ;;  %s820_s22 = scalar_lea.hbm %s1263_s3, 64 }
  0x6b   : > { %p817_p9 = scmp.ne.s32.totalorder %s1152_s28, %s816_s30  ;;  %p821_p6 = scmp.lt.u32.totalorder %s1152_s28, %s1263_s3 }
  0x6c   : > { %p822_p13 = scmp.lt.u32.totalorder %s820_s22, %s816_s30  ;;  %p824_p8 = scmp.lt.u32.totalorder %s816_s30, %s1152_s28 }
  0x6d   : > { %p818_p11 = pnand %p817_p9, %p1278_p0 }
  0x6e   : > { %p823_p5 = por %p822_p13, %p821_p6 }
  0x6f   : > { %p819_p3 = pneg %p818_p11 }
  0x70   : > { %p825_p7 = por %p824_p8, %p823_p5 }
  0x72   : > { %p826_p4 = pnand %p825_p7, %p819_p3 }
  0x74   : > { %829 = shalt.err (!%p826_p4)
}
  0x75   : > { %665 = dma.vmem_to_hbm [thread:$0]  (%p1278_p0), %s1154_s4, 32, %s1152_s28, %s451_s11   ;;  %v299_v34 = vunpack.c.0.s8 %v298_v26  ;;  %v326_v35 = vmax.f32 %v324_v29, %v325_v33  ;;  %v361_v36 = vrot.slane %v1129_v9, %v360_v30  ;;  %v365_v37 = vrot.slane %v1129_v9, %v364_v31  ;;  %v394_v28 = vld [vmem:[%s1115_s29] sm:$0x3] }
  0x76   : > { %s467_s4 = sshll.u32 %s1115_s29, 4  ;;  %s1208_s11 = scalar_lea.hbm %s1262_s2, %s658_s24  ;;  %s1210_s4 = int_to_ptr.vmem [resolvable:$true] %s467_s4 }
  0x77   : > { %v329_v38 = vcombine.low %v1161_v32, %v326_v35  ;;  %v302_v39 = vsub.s32 %v299_v34, %v1125_v6  ;;  %v369_v41 = vrot.slane %v361_v36, %v360_v30  ;;  %v373_v42 = vrot.slane %v365_v37, %v360_v30  ;;  %s446_s19 = scalar_lea.sflag [#allocation5], %s1097_s23  ;;  %s830_s21 = scalar_lea.vmem %s1210_s4, 32 }
  0x78   : > { %p831_p10 = scmp.ne.s32.totalorder %s1210_s4, %s830_s21  ;;  %s928_s15 = smov [#allocation8]  }
  0x79   : > { %v331_v40 = vsub.f32 %v1127_v7, %v329_v38  ;;  %v303_v44 = vrot.slane %v1125_v6, %v302_v39  ;;  %v374_v45 = vcombine.low %v369_v41, %v373_v42  ;;  %s834_s8 = sshll.u32 %s928_s15, 4  ;;  %s835_s8 = int_to_ptr.vmem [resolvable:$false] %s834_s8 }
  0x7a   : > { %p832_p12 = pnand %p831_p10, %p1278_p0  ;;  %s836_s10 = scalar_lea.vmem %s835_s8, 64 }
  0x7b   : > { %v332_v43 = vmul.f32 1.442695, %v331_v40  ;;  %vm375_vm3 = vcmp.eq.s32.totalorder %v303_v44, %v374_v45  ;;  %p837_p2 = scmp.lt.s32.totalorder %s1210_s4, %s835_s8  ;;  %p838_p9 = scmp.lt.s32.totalorder %s836_s10, %s830_s21 }
  0x7c   : > { %v376_v46 = vsel %vm375_vm3, %v1127_v7, 0.0  ;;  %p833_p1 = pneg %p832_p12 }
  0x7d   : > { %736 = vpow2.f32 %v332_v43  ;;  %v378_v48 = vcombine.high %v376_v46, %v376_v46  ;;  %v380_v52 = vsel %vm312_vm1, %v376_v46, 0.0  ;;  %p839_p11 = por %p838_p9, %p837_p2 }
  0x7e   : > { %v381_v57 = vrot.slane %v380_v52, 4 }
  0x7f   : > { %v387_v56 = vsel %vm312_vm1, %v378_v48, 0.0  ;;  %p840_p3 = pnand %p839_p11, %p833_p1 }
  0x80   : > { %v388_v60 = vrot.slane %v387_v56, 4  ;;  %v382_v63 = vadd.f32 %v381_v57, %v380_v52 }
  0x82   : > { %v389_v3 = vadd.f32 %v388_v60, %v387_v56  ;;  %v383_v6 = vrot.slane %v382_v63, 2 }
  0x84   : > { %v390_v8 = vrot.slane %v389_v3, 2  ;;  %v384_v10 = vadd.f32 %v383_v6, %v382_v63 }
  0x86   : > { %v391_v11 = vadd.f32 %v390_v8, %v389_v3  ;;  %v385_v13 = vrot.slane %v384_v10, 1 }
  0x87   : > { %v737_v47 = vpop.eup %736 }
  0x88   : > { %v335_v49 = vcombine.high %v737_v47, %v737_v47  ;;  %v337_v50 = vsel %vm312_vm1, %v737_v47, 0.0  ;;  %v392_v14 = vrot.slane %v391_v11, 1  ;;  %v386_v17 = vadd.f32 %v385_v13, %v384_v10 }
  0x89   : > { %v338_v51 = vrot.slane %v337_v50, 4 }
  0x8a   : > { %v344_v53 = vsel %vm312_vm1, %v335_v49, 0.0  ;;  %v393_v21 = vadd.f32 %v392_v14, %v391_v11 }
  0x8b   : > { %v339_v54 = vadd.f32 %v338_v51, %v337_v50  ;;  %v345_v55 = vrot.slane %v344_v53, 4 }
  0x8d   : > { %v340_v58 = vrot.slane %v339_v54, 2  ;;  %v346_v59 = vadd.f32 %v345_v55, %v344_v53 }
  0x8f   : > { %v341_v61 = vadd.f32 %v340_v58, %v339_v54  ;;  %v347_v62 = vrot.slane %v346_v59, 2 }
  0x91   : > { %v342_v0 = vrot.slane %v341_v61, 1  ;;  %v348_v2 = vadd.f32 %v347_v62, %v346_v59 }
  0x93   : > { %v343_v4 = vadd.f32 %v342_v0, %v341_v61  ;;  %v349_v5 = vrot.slane %v348_v2, 1 }
  0x95   : > { %v350_v7 = vadd.f32 %v349_v5, %v348_v2  ;;  %738 = vlog2.f32 %v343_v4 }
  0x97   : > { %740 = vlog2.f32 %v350_v7 }
  0x9f   : > { %v739_v15 = vpop.eup %738 }
  0xa0   : > { %v352_v16 = vmul.f32 0.6931472, %v739_v15 }
  0xa1   : > { %v741_v18 = vpop.eup %740 }
  0xa2   : > { %v354_v19 = vmul.f32 0.6931472, %v741_v18  ;;  %v355_v20 = vadd.f32 %v352_v16, %v1161_v32 }
  0xa4   : > { %v356_v22 = vadd.f32 %v354_v19, %v326_v35  ;;  %v395_v23 = vsub.f32 %v355_v20, %v386_v17 }
  0xa6   : > { %v396_v24 = vsub.f32 %v356_v22, %v393_v21 }
  0xa8   : > { %v399_v25 = vcombine.low %v395_v23, %v396_v24 }
  0xaa   : > { %v401_v26 = vsel %vm308_vm2, %v399_v25, 0.0 }
  0xab   : > { %v409_v27 = vrot.slane %v401_v26, %v1136_v12 }
  0xad   : > { %v416_v29 = vrot.slane %v409_v27, %v1136_v12 }
  0xaf   : > { %v418_v30 = vadd.f32 %v416_v29, %v394_v28 }
  0xb1   : > { %423 = vst.msk [vmem:[%s1115_s29] sm:$0x3] %vm1111_vm0, %v418_v30 }
  0xb2   : > { %843 = shalt.err (!%p840_p3)
}
  0xb3   : > { %s844_s23 = scalar_lea.hbm %s1208_s11, 32  ;;  %s848_s30 = scalar_lea.hbm %s1262_s2, 64 }
  0xb4   : > { %p845_p6 = scmp.ne.s32.totalorder %s1208_s11, %s844_s23  ;;  %p849_p8 = scmp.lt.u32.totalorder %s1208_s11, %s1262_s2 }
  0xb5   : > { %p850_p7 = scmp.lt.u32.totalorder %s848_s30, %s844_s23  ;;  %p852_p10 = scmp.lt.u32.totalorder %s844_s23, %s1208_s11 }
  0xb6   : > { %p846_p13 = pnand %p845_p6, %p1278_p0 }
  0xb7   : > { %p851_p4 = por %p850_p7, %p849_p8 }
  0xb8   : > { %p847_p5 = pneg %p846_p13 }
  0xb9   : > { %p853_p12 = por %p852_p10, %p851_p4 }
  0xbb   : > { %p854_p1 = pnand %p853_p12, %p847_p5 }
  0xbd   : > { %857 = shalt.err (!%p854_p1)
}
  0xbe   : > { %664 = dma.vmem_to_hbm [thread:$0]  (%p1278_p0), %s1210_s4, 32, %s1208_s11, %s446_s19  }
  0xbf PF: > { %s495_s22 = sand.u32 1, %s900_s12   ;;  %p1279_p2 = scmp.ne.s32.totalorder %s1269_s27, 0 }
  0xc0   : > { %p1280_p9 = scmp.ge.s32.totalorder %s920_s17, 2  ;;  %s496_s6 = scalar_lea.sflag [#allocation5], %s495_s22 }
  0xc2   : > { %p676_p11 = pnand %p1280_p9, %p1279_p2 }
  0xc4   : > { %891 = dma.done.wait (!%p676_p11), %s496_s6, 32  }
  0xc5   : > { %893 = vsyncadd (!%p676_p11), %s496_s6, 4294967264  ;;  %s505_s5 = scalar_lea.sflag [#allocation10], %s495_s22 }
  0xc6   : > { %895 = dma.done.wait (!%p676_p11), %s505_s5, 32  }
  0xc7   : > { %897 = vsyncadd (!%p676_p11), %s505_s5, 4294967264  ;;  %s26_s17 = sadd.s32 1, %s920_s17   ;;  %s1281_s12 = smov %s904_s13 }
  0xc8   : > { %p23_p3 = scmp.ge.s32.totalorder %s26_s17, 4   ;;  %s1282_s13 = smov %s908_s14 }
  0xc9   : > { %s1283_s14 = smov %s1005_s26  ;;  %s1284_s15 = smov %s916_s16 }
  0xca   : > { %s1285_s16 = smov %s1287_s20  ;;  %25 = sbr.rel (!%p23_p3) target bundleno = 10 (0xa), region = 107 }
  0xd1   :  { %510 = vsyncpa [#allocation4], 1 }
  0xd2   :  { %512 = vsyncpa [#allocation4 + $0x1], 1 }
  0xd3   :  { %513 = vsyncpa [#allocation7], 1 }
  0xd4   :  { %515 = vsyncpa [#allocation7 + $0x1], 1 }
  0xd5   :  { %516 = vsyncpa [#allocation5], 1 }
  0xd6   :  { %518 = vsyncpa [#allocation5 + $0x1], 1 }
  0xd7   :  { %519 = vsyncpa [#allocation10], 1 }
  0xd8   :  { %521 = vsyncpa [#allocation10 + $0x1], 1 }

</bundles_post_ra>
